<compile_context>
chip_gen: v5e
topology: v5e:2x2
jax: 0.10.0
libtpu: 0.0.40
codegen_flags: <defaults>
</compile_context>

<pallas_src>
import functools

import jax
import jax.numpy as jnp
from jax.experimental import pallas as pl
from jax.experimental.pallas import tpu as pltpu


def _ceil_to(x, m):
    return (x + m - 1) // m * m


def _cdiv(a, b):
    return -(-a // b)


def _vmem_capacity_bytes():
    try:
        return int(pltpu.get_tpu_info().vmem_capacity_bytes)
    except Exception:
        return 64 * 1024 * 1024   # v7x per-TC size: safe lower bound for every generation


def _attn_gn_kernel(x_ref, mgc_ref, mcg_ref, wconv_ref, wT_ref, bT_ref, o_ref,
                    sum_acc, sumsq_acc, coef_a, coef_b, *,
                    hw, n_ch, cg, nk, n_cblk, cblk, n_tiles, tile,
                    mask_sub, mask_lanes, eps, eps_var, gn_attn_eps, apply_dtype):
    p = pl.program_id(1)   # phase: 0 = accumulate statistics, 1 = apply
    c = pl.program_id(2)   # channel-block index
    t = pl.program_id(3)   # HW lane-tile index

    # ---------------- phase 0: per-channel sum / sum-of-squares over all tiles -----------
    @pl.when((p == 0) & (c == 0) & (t == 0))
    def _zero():
        sum_acc[...] = jnp.zeros_like(sum_acc)
        sumsq_acc[...] = jnp.zeros_like(sumsq_acc)

    @pl.when(p == 0)
    def _stats():
        x2d = x_ref[0].astype(jnp.float32)                       # (cblk, tile)
        if mask_lanes or mask_sub:
            valid = None
            if mask_lanes:                                       # ragged last HW tile
                lane = jax.lax.broadcasted_iota(jnp.int32, x2d.shape, 1)
                valid = (t * tile + lane) < hw
            if mask_sub:                                         # ragged last C block
                sub = jax.lax.broadcasted_iota(jnp.int32, x2d.shape, 0)
                vsub = (c * cblk + sub) < n_ch
                valid = vsub if valid is None else jnp.logical_and(valid, vsub)
            x2d = jnp.where(valid, x2d, 0.0)
        s1 = jnp.sum(x2d, axis=1, keepdims=True)
        s2 = jnp.sum(x2d * x2d, axis=1, keepdims=True)
        if n_cblk == 1:
            sum_acc[...] = sum_acc[...] + s1
            sumsq_acc[...] = sumsq_acc[...] + s2
        else:
            off = pl.multiple_of(c * cblk, 8)
            sum_acc[pl.ds(off, cblk), :] = sum_acc[pl.ds(off, cblk), :] + s1
            sumsq_acc[pl.ds(off, cblk), :] = sumsq_acc[pl.ds(off, cblk), :] + s2

    # ---- last phase-0 step: fold GN + attention into out = A*x + B (overlaps phase-1 DMA)
    @pl.when((p == 0) & (c == n_cblk - 1) & (t == n_tiles - 1))
    def _coeffs():
        n = float(hw)
        ch_sum = sum_acc[...]                                    # (Cw, 1)
        ch_sumsq = sumsq_acc[...]
        ch_mean = ch_sum * (1.0 / n)

        # F.group_norm statistics (biased variance): one merged (G, 2) matmul.
        gstats = jnp.dot(mgc_ref[...],
                         jnp.concatenate([ch_sum, ch_sumsq], axis=1),
                         preferred_element_type=jnp.float32)     # (G, 2)
        inv_ng = 1.0 / (float(cg) * n)
        gmean = gstats[:, 0:1] * inv_ng
        # One-pass E[x^2]-E[x]^2; clamp so rounding can never push it below 0.
        gvar = jnp.maximum(gstats[:, 1:2] * inv_ng - gmean * gmean, 0.0)
        grstd = jax.lax.rsqrt(gvar + eps)
        cstats = jnp.dot(mcg_ref[...],
                         jnp.concatenate([gmean, grstd], axis=1),
                         preferred_element_type=jnp.float32)     # (Cw, 2)
        mean_c = cstats[:, 0:1]
        rstd_c = cstats[:, 1:2]

        # AttnWeights (use_rsd): mean * rsqrt(unbiased var + eps_var), per channel.
        ch_var = jnp.maximum((ch_sumsq - n * ch_mean * ch_mean) * (1.0 / (n - 1.0)), 0.0)
        y0 = ch_mean * jax.lax.rsqrt(ch_var + eps_var)           # (Cw, 1)

        # 1x1 conv (no bias) -> GroupNorm(1 group, w=1 b=0) -> HSigmoidv2.
        z = jnp.dot(wconv_ref[...], y0, preferred_element_type=jnp.float32)   # (K, 1)
        invk = 1.0 / float(nk)
        zm = jnp.sum(z, axis=0, keepdims=True) * invk
        zd = z - zm
        zv = jnp.sum(zd * zd, axis=0, keepdims=True) * invk
        y = jnp.clip(zd * jax.lax.rsqrt(zv + gn_attn_eps) + 3.0, 0.0, 6.0) * (1.0 / 6.0)

        # Mixture of affines: w_c = weight_^T @ y, b_c = bias_^T @ y.
        w_c = jnp.dot(wT_ref[...], y, preferred_element_type=jnp.float32)     # (Cw, 1)
        b_c = jnp.dot(bT_ref[...], y, preferred_element_type=jnp.float32)     # (Cw, 1)
        a = w_c * rstd_c                         # folded scale
        coef_a[...] = a
        coef_b[...] = b_c - a * mean_c           # folded offset

    # ---------------- phase 1: streaming apply (single per-channel FMA) -----------------
    @pl.when(p == 1)
    def _apply():
        if n_cblk == 1:
            a = coef_a[...]
            b = coef_b[...]
        else:
            off = pl.multiple_of(c * cblk, 8)
            a = coef_a[pl.ds(off, cblk), :]
            b = coef_b[pl.ds(off, cblk), :]
        if apply_dtype == jnp.float32:
            o_ref[0] = (a * x_ref[0].astype(jnp.float32) + b).astype(o_ref.dtype)
        else:   # native low-precision FMA (bf16): halves VALU/vreg traffic on v6e/v7x
            o_ref[0] = (a.astype(apply_dtype) * x_ref[0].astype(apply_dtype)
                        + b.astype(apply_dtype)).astype(o_ref.dtype)


def attn_group_norm(x, conv_w, weight_, bias_, *, num_groups,
                    eps=1e-5, eps_var=1e-3, gn_attn_eps=1e-5,
                    max_tile=None, max_cblk=None):
    """AttnGroupNorm forward. x: (B, C, H, W); conv_w/weight_/bias_: (K, C)."""
    B, C, H, W = x.shape
    K, C2 = conv_w.shape
    G = num_groups
    HW = H * W
    assert C2 == C and weight_.shape == (K, C) and bias_.shape == (K, C)
    assert C % G == 0, "num_features must be divisible by num_groups"
    assert HW > 1, "use_rsd needs more than one spatial element (unbiased variance)"

    out_dtype = x.dtype
    x3 = x.reshape(B, C, HW)                       # free: metadata-only reshape

    # ---------------- channel-block plan ----------------
    cmax = 1024
    if max_cblk is not None:
        cmax = max(8, (max_cblk // 8) * 8)
    if _ceil_to(C, 8) <= cmax:
        cblk, n_cblk = C, 1                        # block dim == full dim: always legal
        mask_sub = False
    else:
        cblk = cmax                                # multiple of 8
        n_cblk = _cdiv(C, cblk)
        mask_sub = (n_cblk * cblk != C)
    Cw = n_cblk * cblk                             # padded channel count for weights/scratch
    cg = C // G

    # ---------------- host-side prep (tiny arrays only; x itself is untouched) ----------
    ch = jnp.arange(Cw)
    grp = jnp.where(ch < C, ch // cg, G)                                   # pad -> no group
    mgc = (jnp.arange(G)[:, None] == grp[None, :]).astype(jnp.float32)     # (G, Cw)
    mcg = mgc.T                                                            # (Cw, G)
    pad_c = Cw - C
    wconv = jnp.pad(conv_w.astype(jnp.float32), ((0, 0), (0, pad_c)))      # (K, Cw)
    wT = jnp.pad(weight_.astype(jnp.float32).T, ((0, pad_c), (0, 0)))      # (Cw, K)
    bT = jnp.pad(bias_.astype(jnp.float32).T, ((0, pad_c), (0, 0)))        # (Cw, K)

    # ---------------- VMEM plan (per chip generation) ----------------
    vmem_cap = _vmem_capacity_bytes()

    def _blk_bytes(r, cc, item=4):                 # (8,128)-tile-padded VMEM footprint
        return _ceil_to(max(int(r), 1), 8) * _ceil_to(max(int(cc), 1), 128) * item

    weights_bytes = 2 * (_blk_bytes(G, Cw) + _blk_bytes(Cw, G) + _blk_bytes(K, Cw)
                         + 2 * _blk_bytes(Cw, K))              # x2: double-buffered
    scratch_bytes = 4 * _blk_bytes(Cw, 1)
    cpad = _ceil_to(cblk, 8)
    per_lane = 2 * cpad * (jnp.dtype(x.dtype).itemsize + jnp.dtype(out_dtype).itemsize)
    io_budget = max(per_lane * 128, (2 * vmem_cap) // 3 - weights_bytes - scratch_bytes)
    tile_cap = max(128, io_budget // per_lane // 128 * 128)
    if max_tile is not None:
        tile_cap = min(tile_cap, max(128, (max_tile // 128) * 128))
    if HW <= tile_cap:
        tile, n_tiles, mask_lanes = HW, 1, False   # single lane tile: x streamed once
    else:
        tile = tile_cap
        n_tiles = _cdiv(HW, tile)
        mask_lanes = (n_tiles * tile != HW)
    vmem_limit = per_lane * tile + weights_bytes + scratch_bytes + 4 * 1024 * 1024
    vmem_limit = int(min(max(vmem_limit, 16 * 1024 * 1024), (3 * vmem_cap) // 4))

    apply_dtype = jnp.bfloat16 if x.dtype == jnp.bfloat16 else jnp.float32

    kernel = functools.partial(
        _attn_gn_kernel, hw=HW, n_ch=C, cg=cg, nk=K,
        n_cblk=n_cblk, cblk=cblk, n_tiles=n_tiles, tile=tile,
        mask_sub=mask_sub, mask_lanes=mask_lanes,
        eps=eps, eps_var=eps_var, gn_attn_eps=gn_attn_eps, apply_dtype=apply_dtype)

    out = pl.pallas_call(
        kernel,
        out_shape=jax.ShapeDtypeStruct((B, C, HW), out_dtype),
        grid_spec=pltpu.PrefetchScalarGridSpec(
            num_scalar_prefetch=0,
            grid=(B, 2, n_cblk, n_tiles),
            in_specs=[
                pl.BlockSpec((1, cblk, tile), lambda b, p, c, t: (b, c, t)),   # x tile
                pl.BlockSpec((G, Cw), lambda b, p, c, t: (0, 0)),    # group <- channel map
                pl.BlockSpec((Cw, G), lambda b, p, c, t: (0, 0)),    # channel <- group map
                pl.BlockSpec((K, Cw), lambda b, p, c, t: (0, 0)),    # 1x1 conv weight
                pl.BlockSpec((Cw, K), lambda b, p, c, t: (0, 0)),    # weight_^T
                pl.BlockSpec((Cw, K), lambda b, p, c, t: (0, 0)),    # bias_^T
            ],
            # Phase 0 pins the output block at (b, 0, 0) (never flushed with garbage:
            # the same block is the first one written in phase 1); phase 1 walks and
            # writes every block exactly once.
            out_specs=pl.BlockSpec((1, cblk, tile), lambda b, p, c, t: (b, p * c, p * t)),
            scratch_shapes=[
                pltpu.VMEM((Cw, 1), jnp.float32),   # per-channel sum
                pltpu.VMEM((Cw, 1), jnp.float32),   # per-channel sum of squares
                pltpu.VMEM((Cw, 1), jnp.float32),   # folded scale  A
                pltpu.VMEM((Cw, 1), jnp.float32),   # folded offset B
            ],
        ),
        compiler_params=pltpu.CompilerParams(
            dimension_semantics=("parallel", "arbitrary", "arbitrary", "arbitrary"),
            vmem_limit_bytes=vmem_limit),
    )(x3, mgc, mcg, wconv, wT, bT)

    return out.reshape(B, C, H, W)


def _reference(x, conv_w, weight_, bias_, num_groups, eps=1e-5, eps_var=1e-3):
    """Pure-JAX reference mirroring the PyTorch forward exactly."""
    B, C, H, W = x.shape
    G = num_groups
    xg = x.reshape(B, G, (C // G) * H * W)
    mean = xg.mean(axis=-1, keepdims=True)
    var = xg.var(axis=-1, keepdims=True)                        # biased (GroupNorm)
    xn = ((xg - mean) / jnp.sqrt(var + eps)).reshape(B, C, H, W)

    xf = x.reshape(B, C, H * W)
    m = xf.mean(-1)
    v = xf.var(-1, ddof=1)                                      # torch.var_mean (unbiased)
    y0 = m / jnp.sqrt(v + eps_var)                              # (B, C)
    z = y0 @ conv_w.T                                           # (B, K) 1x1 conv
    zm = z.mean(-1, keepdims=True)
    zv = z.var(-1, keepdims=True)
    zn = (z - zm) / jnp.sqrt(zv + 1e-5)                         # GN(1 group), w=1 b=0
    y = jnp.clip(zn + 3.0, 0.0, 6.0) / 6.0                      # HSigmoidv2
    w = y @ weight_
    b = y @ bias_
    return w[:, :, None, None] * xn + b[:, :, None, None]


def _run_case(key, B, C, H, W, K, G, max_tile=None, max_cblk=None, tol=2e-4):
    kx, kc, kw, kb = jax.random.split(key, 4)
    x = jax.random.normal(kx, (B, C, H, W), jnp.float32)
    conv_w = jax.random.normal(kc, (K, C), jnp.float32) * jnp.sqrt(2.0 / K)  # kaiming-like
    weight_ = 1.0 + 0.1 * jax.random.normal(kw, (K, C), jnp.float32)
    bias_ = 0.1 * jax.random.normal(kb, (K, C), jnp.float32)

    out = attn_group_norm(x, conv_w, weight_, bias_, num_groups=G,
                          max_tile=max_tile, max_cblk=max_cblk)
    out = jax.block_until_ready(out)
    ref = _reference(x, conv_w, weight_, bias_, G)
    assert out.shape == (B, C, H, W)
    err = float(jnp.max(jnp.abs(out - ref)))
    assert jnp.allclose(out, ref, atol=tol, rtol=tol), err
    return err


if __name__ == "__main__":
    key = jax.random.PRNGKey(0)
    k1, k2, k3 = jax.random.split(key, 3)
    # 1) degenerate single-tile path: whole (C, HW) resident, x streamed once.
    _run_case(k1, B=2, C=32, H=16, W=16, K=8, G=4)
    # 2) forced multi-tile HW streaming (aligned: no masks).
    _run_case(k1, B=2, C=32, H=16, W=16, K=8, G=4, max_tile=128)
    # 3) unaligned C (20) and HW (81): full-dim blocks, no host padding, no masks.
    _run_case(k2, B=2, C=20, H=9, W=9, K=6, G=5)
    # 4) ragged everything: C-block axis (cblk=8, nC=3) + ragged last HW tile (160/128),
    #    exercises the in-kernel lane/sublane masks and B==1.
    _run_case(k3, B=1, C=20, H=16, W=10, K=6, G=5, max_tile=128, max_cblk=8)
    print("KERNEL_OK")
</pallas_src>

<mosaic_0001>
module attributes {stable_mosaic.version = 11 : i64} {
  func.func @_attn_gn_kernel(%arg0: i32, %arg1: i32, %arg2: i32, %arg3: i32, %arg4: memref<1x32x256xf32, #tpu.memory_space<vmem>>, %arg5: memref<4x32xf32, #tpu.memory_space<vmem>>, %arg6: memref<32x4xf32, #tpu.memory_space<vmem>>, %arg7: memref<8x32xf32, #tpu.memory_space<vmem>>, %arg8: memref<32x8xf32, #tpu.memory_space<vmem>>, %arg9: memref<32x8xf32, #tpu.memory_space<vmem>>, %arg10: memref<1x32x256xf32, #tpu.memory_space<vmem>>, %arg11: memref<32x1xf32, #tpu.memory_space<vmem>>, %arg12: memref<32x1xf32, #tpu.memory_space<vmem>>, %arg13: memref<32x1xf32, #tpu.memory_space<vmem>>, %arg14: memref<32x1xf32, #tpu.memory_space<vmem>>) attributes {dimension_semantics = [#tpu.dimension_semantics<parallel>, #tpu.dimension_semantics<arbitrary>, #tpu.dimension_semantics<arbitrary>, #tpu.dimension_semantics<arbitrary>], iteration_bounds = array<i64: 2, 2, 1, 1>, scalar_prefetch = 0 : i64, scratch_operands = 4 : i64, tpu.core_type = #tpu.core_type<tc>, window_params = [{transform_indices = @transform_0, window_bounds = array<i64: 1, 32, 256>}, {pipeline_mode = #tpu.pipeline_mode<synchronous>, transform_indices = @transform_1, window_bounds = array<i64: 4, 32>}, {pipeline_mode = #tpu.pipeline_mode<synchronous>, transform_indices = @transform_2, window_bounds = array<i64: 32, 4>}, {pipeline_mode = #tpu.pipeline_mode<synchronous>, transform_indices = @transform_3, window_bounds = array<i64: 8, 32>}, {pipeline_mode = #tpu.pipeline_mode<synchronous>, transform_indices = @transform_4, window_bounds = array<i64: 32, 8>}, {pipeline_mode = #tpu.pipeline_mode<synchronous>, transform_indices = @transform_5, window_bounds = array<i64: 32, 8>}, {transform_indices = @transform_6, window_bounds = array<i64: 1, 32, 256>}]} {
    %c0_i32 = arith.constant 0 : i32
    %0 = arith.cmpi eq, %arg1, %c0_i32 : i32
    %c0_i32_0 = arith.constant 0 : i32
    %1 = arith.cmpi eq, %arg2, %c0_i32_0 : i32
    %2 = arith.andi %0, %1 : i1
    %c0_i32_1 = arith.constant 0 : i32
    %3 = arith.cmpi eq, %arg3, %c0_i32_1 : i32
    %4 = arith.andi %2, %3 : i1
    %5 = arith.extui %4 : i1 to i32
    %c0_i32_2 = arith.constant 0 : i32
    %6 = arith.cmpi ne, %5, %c0_i32_2 : i32
    scf.if %6 {
      %cst = arith.constant 0.000000e+00 : f32
      %20 = vector.broadcast %cst : f32 to vector<32x1xf32>
      %c0 = arith.constant 0 : index
      %c0_10 = arith.constant 0 : index
      %21 = vector.load %arg11[%c0, %c0_10] : memref<32x1xf32, #tpu.memory_space<vmem>>, vector<32x1xf32>
      tpu.vector_store %arg11[%c0, %c0_10], %20 {strides = array<i32>} : memref<32x1xf32, #tpu.memory_space<vmem>>, vector<32x1xf32>,
      %cst_11 = arith.constant 0.000000e+00 : f32
      %22 = vector.broadcast %cst_11 : f32 to vector<32x1xf32>
      %c0_12 = arith.constant 0 : index
      %c0_13 = arith.constant 0 : index
      %23 = vector.load %arg12[%c0_12, %c0_13] : memref<32x1xf32, #tpu.memory_space<vmem>>, vector<32x1xf32>
      tpu.vector_store %arg12[%c0_12, %c0_13], %22 {strides = array<i32>} : memref<32x1xf32, #tpu.memory_space<vmem>>, vector<32x1xf32>,
    } else {
    }
    %c0_i32_3 = arith.constant 0 : i32
    %7 = arith.cmpi eq, %arg1, %c0_i32_3 : i32
    %8 = arith.extui %7 : i1 to i32
    %c0_i32_4 = arith.constant 0 : i32
    %9 = arith.cmpi ne, %8, %c0_i32_4 : i32
    scf.if %9 {
      %c0 = arith.constant 0 : index
      %c0_10 = arith.constant 0 : index
      %c0_11 = arith.constant 0 : index
      %20 = vector.load %arg4[%c0, %c0_10, %c0_11] : memref<1x32x256xf32, #tpu.memory_space<vmem>>, vector<1x32x256xf32>
      %21 = vector.shape_cast %20 : vector<1x32x256xf32> to vector<32x256xf32>
      %cst = arith.constant dense<0.000000e+00> : vector<32xf32>
      %22 = vector.multi_reduction <add>, %21, %cst [1] : vector<32x256xf32> to vector<32xf32>
      %23 = vector.shape_cast %22 : vector<32xf32> to vector<32x1xf32>
      %24 = arith.mulf %21, %21 : vector<32x256xf32>
      %cst_12 = arith.constant dense<0.000000e+00> : vector<32xf32>
      %25 = vector.multi_reduction <add>, %24, %cst_12 [1] : vector<32x256xf32> to vector<32xf32>
      %26 = vector.shape_cast %25 : vector<32xf32> to vector<32x1xf32>
      %c0_13 = arith.constant 0 : index
      %c0_14 = arith.constant 0 : index
      %27 = vector.load %arg11[%c0_13, %c0_14] : memref<32x1xf32, #tpu.memory_space<vmem>>, vector<32x1xf32>
      %28 = arith.addf %27, %23 : vector<32x1xf32>
      %c0_15 = arith.constant 0 : index
      %c0_16 = arith.constant 0 : index
      %29 = vector.load %arg11[%c0_15, %c0_16] : memref<32x1xf32, #tpu.memory_space<vmem>>, vector<32x1xf32>
      tpu.vector_store %arg11[%c0_15, %c0_16], %28 {strides = array<i32>} : memref<32x1xf32, #tpu.memory_space<vmem>>, vector<32x1xf32>,
      %c0_17 = arith.constant 0 : index
      %c0_18 = arith.constant 0 : index
      %30 = vector.load %arg12[%c0_17, %c0_18] : memref<32x1xf32, #tpu.memory_space<vmem>>, vector<32x1xf32>
      %31 = arith.addf %30, %26 : vector<32x1xf32>
      %c0_19 = arith.constant 0 : index
      %c0_20 = arith.constant 0 : index
      %32 = vector.load %arg12[%c0_19, %c0_20] : memref<32x1xf32, #tpu.memory_space<vmem>>, vector<32x1xf32>
      tpu.vector_store %arg12[%c0_19, %c0_20], %31 {strides = array<i32>} : memref<32x1xf32, #tpu.memory_space<vmem>>, vector<32x1xf32>,
    } else {
    }
    %c0_i32_5 = arith.constant 0 : i32
    %10 = arith.cmpi eq, %arg1, %c0_i32_5 : i32
    %c0_i32_6 = arith.constant 0 : i32
    %11 = arith.cmpi eq, %arg2, %c0_i32_6 : i32
    %12 = arith.andi %10, %11 : i1
    %c0_i32_7 = arith.constant 0 : i32
    %13 = arith.cmpi eq, %arg3, %c0_i32_7 : i32
    %14 = arith.andi %12, %13 : i1
    %15 = arith.extui %14 : i1 to i32
    %c0_i32_8 = arith.constant 0 : i32
    %16 = arith.cmpi ne, %15, %c0_i32_8 : i32
    scf.if %16 {
      %c0 = arith.constant 0 : index
      %c0_10 = arith.constant 0 : index
      %20 = vector.load %arg11[%c0, %c0_10] : memref<32x1xf32, #tpu.memory_space<vmem>>, vector<32x1xf32>
      %c0_11 = arith.constant 0 : index
      %c0_12 = arith.constant 0 : index
      %21 = vector.load %arg12[%c0_11, %c0_12] : memref<32x1xf32, #tpu.memory_space<vmem>>, vector<32x1xf32>
      %cst = arith.constant 3.906250e-03 : f32
      %22 = vector.broadcast %cst : f32 to vector<32x1xf32>
      %23 = arith.mulf %20, %22 : vector<32x1xf32>
      %c0_13 = arith.constant 0 : index
      %c0_14 = arith.constant 0 : index
      %24 = vector.load %arg5[%c0_13, %c0_14] : memref<4x32xf32, #tpu.memory_space<vmem>>, vector<4x32xf32>
      %25 = tpu.concatenate %20, %21 in 1 : vector<32x1xf32>, vector<32x1xf32> -> vector<32x2xf32>
      %cst_15 = arith.constant dense<0.000000e+00> : vector<4x2xf32>
      %26 = tpu.matmul %24, %25, %cst_15 {dimension_numbers = #tpu.dot_dimension_numbers<[1], [0], [0], [1], [0, 0, 1, 1], [], []>} : vector<4x32xf32>, vector<32x2xf32>, vector<4x2xf32> -> vector<4x2xf32>
      %27 = vector.extract_strided_slice %26 {offsets = [0, 0], sizes = [4, 1], strides = [1, 1]} : vector<4x2xf32> to vector<4x1xf32>
      %cst_16 = arith.constant 4.8828125E-4 : f32
      %28 = vector.broadcast %cst_16 : f32 to vector<4x1xf32>
      %29 = arith.mulf %27, %28 : vector<4x1xf32>
      %30 = vector.extract_strided_slice %26 {offsets = [0, 1], sizes = [4, 1], strides = [1, 1]} : vector<4x2xf32> to vector<4x1xf32>
      %cst_17 = arith.constant 4.8828125E-4 : f32
      %31 = vector.broadcast %cst_17 : f32 to vector<4x1xf32>
      %32 = arith.mulf %30, %31 : vector<4x1xf32>
      %33 = arith.mulf %29, %29 : vector<4x1xf32>
      %34 = arith.subf %32, %33 : vector<4x1xf32>
      %cst_18 = arith.constant 0.000000e+00 : f32
      %35 = vector.broadcast %cst_18 : f32 to vector<4x1xf32>
      %36 = arith.maximumf %34, %35 : vector<4x1xf32>
      %cst_19 = arith.constant 9.99999974E-6 : f32
      %37 = vector.broadcast %cst_19 : f32 to vector<4x1xf32>
      %38 = arith.addf %36, %37 : vector<4x1xf32>
      %39 = math.rsqrt %38 : vector<4x1xf32>
      %c0_20 = arith.constant 0 : index
      %c0_21 = arith.constant 0 : index
      %40 = vector.load %arg6[%c0_20, %c0_21] : memref<32x4xf32, #tpu.memory_space<vmem>>, vector<32x4xf32>
      %41 = tpu.concatenate %29, %39 in 1 : vector<4x1xf32>, vector<4x1xf32> -> vector<4x2xf32>
      %cst_22 = arith.constant dense<0.000000e+00> : vector<32x2xf32>
      %42 = tpu.matmul %40, %41, %cst_22 {dimension_numbers = #tpu.dot_dimension_numbers<[1], [0], [0], [1], [0, 0, 1, 1], [], []>} : vector<32x4xf32>, vector<4x2xf32>, vector<32x2xf32> -> vector<32x2xf32>
      %43 = vector.extract_strided_slice %42 {offsets = [0, 0], sizes = [32, 1], strides = [1, 1]} : vector<32x2xf32> to vector<32x1xf32>
      %44 = vector.extract_strided_slice %42 {offsets = [0, 1], sizes = [32, 1], strides = [1, 1]} : vector<32x2xf32> to vector<32x1xf32>
      %cst_23 = arith.constant 2.560000e+02 : f32
      %45 = vector.broadcast %cst_23 : f32 to vector<32x1xf32>
      %46 = arith.mulf %45, %23 : vector<32x1xf32>
      %47 = arith.mulf %46, %23 : vector<32x1xf32>
      %48 = arith.subf %21, %47 : vector<32x1xf32>
      %cst_24 = arith.constant 0.00392156886 : f32
      %49 = vector.broadcast %cst_24 : f32 to vector<32x1xf32>
      %50 = arith.mulf %48, %49 : vector<32x1xf32>
      %cst_25 = arith.constant 0.000000e+00 : f32
      %51 = vector.broadcast %cst_25 : f32 to vector<32x1xf32>
      %52 = arith.maximumf %50, %51 : vector<32x1xf32>
      %cst_26 = arith.constant 1.000000e-03 : f32
      %53 = vector.broadcast %cst_26 : f32 to vector<32x1xf32>
      %54 = arith.addf %52, %53 : vector<32x1xf32>
      %55 = math.rsqrt %54 : vector<32x1xf32>
      %56 = arith.mulf %23, %55 : vector<32x1xf32>
      %c0_27 = arith.constant 0 : index
      %c0_28 = arith.constant 0 : index
      %57 = vector.load %arg7[%c0_27, %c0_28] : memref<8x32xf32, #tpu.memory_space<vmem>>, vector<8x32xf32>
      %cst_29 = arith.constant dense<0.000000e+00> : vector<8x1xf32>
      %58 = tpu.matmul %57, %56, %cst_29 {dimension_numbers = #tpu.dot_dimension_numbers<[1], [0], [0], [1], [0, 0, 1, 1], [], []>} : vector<8x32xf32>, vector<32x1xf32>, vector<8x1xf32> -> vector<8x1xf32>
      %cst_30 = arith.constant dense<0.000000e+00> : vector<1xf32>
      %59 = vector.multi_reduction <add>, %58, %cst_30 [0] : vector<8x1xf32> to vector<1xf32>
      %60 = vector.shape_cast %59 : vector<1xf32> to vector<1x1xf32>
      %cst_31 = arith.constant 1.250000e-01 : f32
      %61 = vector.broadcast %cst_31 : f32 to vector<1x1xf32>
      %62 = arith.mulf %60, %61 : vector<1x1xf32>
      %63 = vector.broadcast %62 : vector<1x1xf32> to vector<8x1xf32>
      %64 = arith.subf %58, %63 : vector<8x1xf32>
      %65 = arith.mulf %64, %64 : vector<8x1xf32>
      %cst_32 = arith.constant dense<0.000000e+00> : vector<1xf32>
      %66 = vector.multi_reduction <add>, %65, %cst_32 [0] : vector<8x1xf32> to vector<1xf32>
      %67 = vector.shape_cast %66 : vector<1xf32> to vector<1x1xf32>
      %cst_33 = arith.constant 1.250000e-01 : f32
      %68 = vector.broadcast %cst_33 : f32 to vector<1x1xf32>
      %69 = arith.mulf %67, %68 : vector<1x1xf32>
      %cst_34 = arith.constant 9.99999974E-6 : f32
      %70 = vector.broadcast %cst_34 : f32 to vector<1x1xf32>
      %71 = arith.addf %69, %70 : vector<1x1xf32>
      %72 = math.rsqrt %71 : vector<1x1xf32>
      %73 = vector.broadcast %72 : vector<1x1xf32> to vector<8x1xf32>
      %74 = arith.mulf %64, %73 : vector<8x1xf32>
      %cst_35 = arith.constant 3.000000e+00 : f32
      %75 = vector.broadcast %cst_35 : f32 to vector<8x1xf32>
      %76 = arith.addf %74, %75 : vector<8x1xf32>
      %cst_36 = arith.constant 0.000000e+00 : f32
      %cst_37 = arith.constant 6.000000e+00 : f32
      %77 = vector.broadcast %cst_36 : f32 to vector<8x1xf32>
      %78 = arith.maximumf %77, %76 : vector<8x1xf32>
      %79 = vector.broadcast %cst_37 : f32 to vector<8x1xf32>
      %80 = arith.minimumf %79, %78 : vector<8x1xf32>
      %cst_38 = arith.constant 0.166666672 : f32
      %81 = vector.broadcast %cst_38 : f32 to vector<8x1xf32>
      %82 = arith.mulf %80, %81 : vector<8x1xf32>
      %c0_39 = arith.constant 0 : index
      %c0_40 = arith.constant 0 : index
      %83 = vector.load %arg8[%c0_39, %c0_40] : memref<32x8xf32, #tpu.memory_space<vmem>>, vector<32x8xf32>
      %cst_41 = arith.constant dense<0.000000e+00> : vector<32x1xf32>
      %84 = tpu.matmul %83, %82, %cst_41 {dimension_numbers = #tpu.dot_dimension_numbers<[1], [0], [0], [1], [0, 0, 1, 1], [], []>} : vector<32x8xf32>, vector<8x1xf32>, vector<32x1xf32> -> vector<32x1xf32>
      %c0_42 = arith.constant 0 : index
      %c0_43 = arith.constant 0 : index
      %85 = vector.load %arg9[%c0_42, %c0_43] : memref<32x8xf32, #tpu.memory_space<vmem>>, vector<32x8xf32>
      %cst_44 = arith.constant dense<0.000000e+00> : vector<32x1xf32>
      %86 = tpu.matmul %85, %82, %cst_44 {dimension_numbers = #tpu.dot_dimension_numbers<[1], [0], [0], [1], [0, 0, 1, 1], [], []>} : vector<32x8xf32>, vector<8x1xf32>, vector<32x1xf32> -> vector<32x1xf32>
      %87 = arith.mulf %84, %44 : vector<32x1xf32>
      %c0_45 = arith.constant 0 : index
      %c0_46 = arith.constant 0 : index
      %88 = vector.load %arg13[%c0_45, %c0_46] : memref<32x1xf32, #tpu.memory_space<vmem>>, vector<32x1xf32>
      tpu.vector_store %arg13[%c0_45, %c0_46], %87 {strides = array<i32>} : memref<32x1xf32, #tpu.memory_space<vmem>>, vector<32x1xf32>,
      %89 = arith.mulf %87, %43 : vector<32x1xf32>
      %90 = arith.subf %86, %89 : vector<32x1xf32>
      %c0_47 = arith.constant 0 : index
      %c0_48 = arith.constant 0 : index
      %91 = vector.load %arg14[%c0_47, %c0_48] : memref<32x1xf32, #tpu.memory_space<vmem>>, vector<32x1xf32>
      tpu.vector_store %arg14[%c0_47, %c0_48], %90 {strides = array<i32>} : memref<32x1xf32, #tpu.memory_space<vmem>>, vector<32x1xf32>,
    } else {
    }
    %c1_i32 = arith.constant 1 : i32
    %17 = arith.cmpi eq, %arg1, %c1_i32 : i32
    %18 = arith.extui %17 : i1 to i32
    %c0_i32_9 = arith.constant 0 : i32
    %19 = arith.cmpi ne, %18, %c0_i32_9 : i32
    scf.if %19 {
      %c0 = arith.constant 0 : index
      %c0_10 = arith.constant 0 : index
      %20 = vector.load %arg13[%c0, %c0_10] : memref<32x1xf32, #tpu.memory_space<vmem>>, vector<32x1xf32>
      %c0_11 = arith.constant 0 : index
      %c0_12 = arith.constant 0 : index
      %21 = vector.load %arg14[%c0_11, %c0_12] : memref<32x1xf32, #tpu.memory_space<vmem>>, vector<32x1xf32>
      %c0_13 = arith.constant 0 : index
      %c0_14 = arith.constant 0 : index
      %c0_15 = arith.constant 0 : index
      %22 = vector.load %arg4[%c0_13, %c0_14, %c0_15] : memref<1x32x256xf32, #tpu.memory_space<vmem>>, vector<1x32x256xf32>
      %23 = vector.shape_cast %22 : vector<1x32x256xf32> to vector<32x256xf32>
      %24 = vector.broadcast %20 : vector<32x1xf32> to vector<32x256xf32>
      %25 = arith.mulf %24, %23 : vector<32x256xf32>
      %26 = vector.broadcast %21 : vector<32x1xf32> to vector<32x256xf32>
      %27 = arith.addf %25, %26 : vector<32x256xf32>
      %c0_16 = arith.constant 0 : index
      %c0_17 = arith.constant 0 : index
      %c0_18 = arith.constant 0 : index
      %28 = vector.load %arg10[%c0_16, %c0_17, %c0_18] : memref<1x32x256xf32, #tpu.memory_space<vmem>>, vector<1x32x256xf32>
      %29 = vector.shape_cast %28 : vector<1x32x256xf32> to vector<32x256xf32>
      %30 = vector.shape_cast %27 : vector<32x256xf32> to vector<1x32x256xf32>
      tpu.vector_store %arg10[%c0_16, %c0_17, %c0_18], %30 {strides = array<i32>} : memref<1x32x256xf32, #tpu.memory_space<vmem>>, vector<1x32x256xf32>,
    } else {
    }
    return
  }
  func.func @transform_0(%arg0: i32, %arg1: i32, %arg2: i32, %arg3: i32) -> (i32, i32, i32) {
    %c0_i32 = arith.constant 0 : i32
    return %arg0, %arg2, %arg3 : i32, i32, i32
  }
  func.func @transform_1(%arg0: i32, %arg1: i32, %arg2: i32, %arg3: i32) -> (i32, i32) {
    %c0_i32 = arith.constant 0 : i32
    %c0_i32_0 = arith.constant 0 : i32
    %c0_i32_1 = arith.constant 0 : i32
    return %c0_i32, %c0_i32_0 : i32, i32
  }
  func.func @transform_2(%arg0: i32, %arg1: i32, %arg2: i32, %arg3: i32) -> (i32, i32) {
    %c0_i32 = arith.constant 0 : i32
    %c0_i32_0 = arith.constant 0 : i32
    %c0_i32_1 = arith.constant 0 : i32
    return %c0_i32, %c0_i32_0 : i32, i32
  }
  func.func @transform_3(%arg0: i32, %arg1: i32, %arg2: i32, %arg3: i32) -> (i32, i32) {
    %c0_i32 = arith.constant 0 : i32
    %c0_i32_0 = arith.constant 0 : i32
    %c0_i32_1 = arith.constant 0 : i32
    return %c0_i32, %c0_i32_0 : i32, i32
  }
  func.func @transform_4(%arg0: i32, %arg1: i32, %arg2: i32, %arg3: i32) -> (i32, i32) {
    %c0_i32 = arith.constant 0 : i32
    %c0_i32_0 = arith.constant 0 : i32
    %c0_i32_1 = arith.constant 0 : i32
    return %c0_i32, %c0_i32_0 : i32, i32
  }
  func.func @transform_5(%arg0: i32, %arg1: i32, %arg2: i32, %arg3: i32) -> (i32, i32) {
    %c0_i32 = arith.constant 0 : i32
    %c0_i32_0 = arith.constant 0 : i32
    %c0_i32_1 = arith.constant 0 : i32
    return %c0_i32, %c0_i32_0 : i32, i32
  }
  func.func @transform_6(%arg0: i32, %arg1: i32, %arg2: i32, %arg3: i32) -> (i32, i32, i32) {
    %0 = arith.muli %arg1, %arg2 : i32
    %1 = arith.muli %arg1, %arg3 : i32
    %c0_i32 = arith.constant 0 : i32
    return %arg0, %0, %1 : i32, i32, i32
  }
}

</mosaic_0001>

<bundles_post_ra>
// kernel: tpu_custom_call.1
= control target key start
LH: loop header
LB: loop body
LE: loop exit
PB: predicated region body
PF: predicated region fallthrough
CT: control target
= control target key end

     0   :  { %11 = vsyncpa [#allocation7], 0  ;;  %s1575_s0 = inlined_call_operand.hbm [shape: f32[2,32,256], index: 0, kind: input, shape index: {}]   ;;  %s1576_s1 = inlined_call_operand.vmem [shape: f32[4,32], index: 1, kind: input, shape index: {}]   ;;  %s1577_s2 = inlined_call_operand.vmem [shape: f32[32,4], index: 2, kind: input, shape index: {}]   ;;  %s1578_s3 = inlined_call_operand.vmem [shape: f32[8,32], index: 3, kind: input, shape index: {}]   ;;  %s1579_s4 = inlined_call_operand.vmem [shape: f32[32,8], index: 4, kind: input, shape index: {}]   ;;  %s1580_s5 = inlined_call_operand.vmem [shape: f32[32,8], index: 5, kind: input, shape index: {}]   ;;  %s1581_s6 = inlined_call_operand.hbm [shape: f32[2,32,256], index: 6, kind: output, shape index: {}]  }
   0x1   :  { %13 = vsyncpa [#allocation7 + $0x1], 0 }
   0x2   :  { %14 = vsyncpa [#allocation8], 0 }
   0x3   :  { %16 = vsyncpa [#allocation8 + $0x1], 0  ;;  %s1319_s21 = smov 0   ;;  %s1321_s22 = smov 0  }
   0x4   :  { %s1323_s23 = smov 0   ;;  %s1325_s24 = smov 0  }
   0x5   :  { %s1327_s25 = smov 0   ;;  %s1329_s26 = smov 0  }
   0x6   :  { %s1331_s27 = smov 0   ;;  %s1333_s28 = smov 0  }
   0x7 LB: > { %1585 = sst [smem:[#allocation12_spill]] %s1266_s26  ;;  %s997_s29 = sadd.s32 4294967295, %s1274_s28   ;;  %s1274_s28 = sphi %s1333_s28, %s22_s28   ;;  %s1270_s27 = sphi %s1331_s27, %s1601_s27   ;;  %s1266_s26 = sphi %s1329_s26, %s1595_s26   ;;  %s1262_s25 = sphi %s1327_s25, %s1600_s25   ;;  %s1258_s24 = sphi %s1325_s24, %s1594_s24   ;;  %s1254_s23 = sphi %s1323_s23, %s1599_s23   ;;  %s1250_s22 = sphi %s1321_s22, %s1598_s22   ;;  %s1246_s21 = sphi %s1319_s21, %s1597_s21  }
   0x8   : > { %s998_s30 = sadd.s32 4294967294, %s1274_s28   ;;  %s44_s7 = sadd.s32 1, %s1266_s26 }
   0x9   : > { %s48_s8 = sadd.s32 1, %s1270_s27  ;;  %p46_p0 = scmp.ge.s32.totalorder %s44_s7, 2 }
   0xa   : > { %s59_s9 = sadd.s32 1, %s1254_s23  ;;  %p66_p1 = scmp.ne.s32.totalorder %s1254_s23, %s1250_s22 }
   0xb   : > { %p67_p2 = scmp.eq.s32.totalorder %s1274_s28, 0  ;;  %s1603_s7 = smov (%p46_p0, %s44_s7), 0 }
   0xc   : > { %1586 = sst [smem:[#allocation13_spill]] %s1603_s7  ;;  %s1605_s8 = smov (!%p46_p0, %s48_s8), %s1270_s27 }
   0xd   : > { %p1370_p3 = por %p67_p2, %p66_p1  ;;  %p72_p4 = scmp.ne.s32.totalorder %s1250_s22, %s1246_s21 }
   0xe   : > { %p50_p5 = scmp.ge.s32.totalorder %s1605_s8, 2  ;;  %p73_p6 = scmp.eq.s32.totalorder %s997_s29, 0 }
   0xf   : > { %p209_p7 = scmp.eq.s32.totalorder %s997_s29, 3  ;;  %p215_p8 = scmp.eq.s32.totalorder %s998_s30, 3 }
  0x10   : > { %s1607_s8 = smov (%p50_p5, %s1605_s8), 0  ;;  %p1378_p9 = por %p73_p6, %p72_p4 }
  0x11   : > { %1588 = sst [smem:[#allocation14_spill]] %s1607_s8  ;;  %p1382_p10 = por %p209_p7, %p66_p1 }
  0x12   : > { %s52_s13 = ssub.s32 %s1270_s27, %s1607_s8  ;;  %p1388_p11 = por %p215_p8, %p72_p4 }
  0x13   : > { %p57_p12 = scmp.eq.s32.totalorder %s52_s13, 0  ;;  %p1047_p13 = scmp.lt.s32.totalorder %s1274_s28, 4 }
  0x14   : > { %s1591_s14 = scalar_select %p1388_p11, 1, 0 }
  0x15   : > { %s250_s15 = sand.u32 1, %s1254_s23   ;;  %s1031_s18 = sshll.u32 %s1270_s27, 6 }
  0x16   : > { %1592 = sst [smem:[#allocation15_spill]] %s1591_s14  ;;  %s1001_s17 = sshll.u32 %s250_s15, 6 }
  0x17   : > { %s1395_s16 = scalar_select %p57_p12, %s1254_s23, %s59_s9  }
  0x18   : > { %s264_s29 = scalar_lea.hbm %s1575_s0, %s1031_s18  ;;  %s254_s30 = scalar_lea.vmem [#allocation6], %s1001_s17 }
  0x19   : > { %s267_s7 = sshll.u32 %s254_s30, 4  ;;  %s265_s26 = sshll.u32 %s264_s29, 4  ;;  %s268_s7 = int_to_ptr.vmem [resolvable:$true] %s267_s7  ;;  %s266_s26 = int_to_ptr.hbm [resolvable:$true] %s265_s26 }
  0x1a   : > { %p1040_p0 = pnand %p1047_p13, %p1370_p3  ;;  %p1004_p1 = scmp.ge.s32.totalorder %s1274_s28, 1 }
  0x1b   : > { %s251_s13 = scalar_lea.sflag [#allocation7], %s250_s15  ;;  %s1276_s8 = smov 256  }
  0x1c   : > { %s1277_s14 = smov 16   ;;  %p275_p2 = scmp.lt.s32.totalorder %s1274_s28, 5 }
  0x1d   : > { %1042 = dma.hbm_to_vmem [thread:$0]  (!%p1040_p0), %s266_s26, 1024, %s268_s7, %s251_s13, %s1276_s8, %s1276_s8, %s1277_s14  }
  0x1e   : > { %p276_p4 = pnand %p1004_p1, %p275_p2 }
  0x1f   : > { %s1406_s9 = sand.u32 (!%p276_p4), 1, %s1250_s22  }
  0x20   : > { %279 = sbr.rel (%p276_p4) target bundleno = 1043 (0x413), region = 44  ;;  %s1005_s17 = sshll.u32 (!%p276_p4), %s1406_s9, 6 }
  0x21   : > { %s282_s18 = scalar_lea.sflag (!%p276_p4), [#allocation7], %s1406_s9  ;;  %s1410_s19 = scalar_lea.vmem (!%p276_p4), [#allocation6], %s1005_s17 }
  0x25   : > { %1237 = dma.done.wait (%p1378_p9), %s282_s18, 1024  }
  0x26   : > { %1239 = vsyncadd (%p1378_p9), %s282_s18, 4294966272  ;;  %p321_p3 = scmp.eq.s32.totalorder %s1258_s24, 0  ;;  %s1417_s26 = scalar_lea.vmem [#allocation9], %s1005_s17 }
  0x27   : > { %vm330_vm0 = vcmask (%p321_p3), 7168   ;;  %v1278_v0 = vmov (%p321_p3), 0.0  }
  0x28   : > { %329 = sbr.rel (!%p321_p3) target bundleno = 48 (0x30), region = 52  ;;  %331 = vst.msk [vmem:[#allocation2] sm:$0xff] (%p321_p3), %vm330_vm0, %v1278_v0 }
  0x29   : > { %332 = vst.msk [vmem:[#allocation2 + $0x8] sm:$0xff] (%p321_p3), %vm330_vm0, %v1278_v0 }
  0x2a   : > { %333 = vst.msk [vmem:[#allocation2 + $0x10] sm:$0xff] (%p321_p3), %vm330_vm0, %v1278_v0 }
  0x2b   : > { %334 = vst.msk [vmem:[#allocation2 + $0x18] sm:$0xff] (%p321_p3), %vm330_vm0, %v1278_v0 }
  0x2c   : > { %335 = vst.msk [vmem:[#allocation3] sm:$0xff] (%p321_p3), %vm330_vm0, %v1278_v0 }
  0x2d   : > { %336 = vst.msk [vmem:[#allocation3 + $0x8] sm:$0xff] %vm330_vm0, %v1278_v0 }
  0x2e   : > { %337 = vst.msk [vmem:[#allocation3 + $0x10] sm:$0xff] %vm330_vm0, %v1278_v0 }
  0x2f   : > { %338 = vst.msk [vmem:[#allocation3 + $0x18] sm:$0xff] %vm330_vm0, %v1278_v0 }
  0x30 PF: > { %p1009_p5 = scmp.ne.s32.totalorder %s1258_s24, 0 }
  0x32   : > { %341 = sbr.rel (%p1009_p5) target bundleno = 194 (0xc2), region = 56 }
  0x37   : > { %v346_v1 = vld [vmem:[%s1410_s19 + $0x20] sm:$0xff]  ;;  %v347_v2 = vld [vmem:[%s1410_s19 + $0x28] sm:$0xff]  ;;  %v348_v9 = vld [vmem:[%s1410_s19 + $0x30] sm:$0xff]  ;;  %vm390_vm1 = vcmask 7168  }
  0x38   : > { %v342_v3 = vld [vmem:[%s1410_s19] sm:$0xff]  ;;  %v356_v4 = vadd.f32 %v347_v2, %v346_v1  ;;  %v343_v5 = vld [vmem:[%s1410_s19 + $0x8] sm:$0xff]  ;;  %v349_v10 = vld [vmem:[%s1410_s19 + $0x38] sm:$0xff]  ;;  %v368_v19 = vmul.f32 %v348_v9, %v348_v9  ;;  %v366_v21 = vmul.f32 %v346_v1, %v346_v1  ;;  %v367_v22 = vmul.f32 %v347_v2, %v347_v2 }
  0x39   : > { %v362_v6 = vmul.f32 %v342_v3, %v342_v3  ;;  %v350_v7 = vadd.f32 %v343_v5, %v342_v3  ;;  %v363_v8 = vmul.f32 %v343_v5, %v343_v5  ;;  %v344_v12 = vld [vmem:[%s1410_s19 + $0x10] sm:$0xff]  ;;  %v345_v13 = vld [vmem:[%s1410_s19 + $0x18] sm:$0xff]  ;;  %v359_v16 = vadd.f32 %v349_v10, %v348_v9  ;;  %v382_v26 = vld [vmem:[#allocation2] sm:$0xff] }
  0x3a   : > { %357 = vadd.xlane.f32.xlu1 %v356_v4  ;;  %v364_v14 = vmul.f32 %v344_v12, %v344_v12  ;;  %v365_v15 = vmul.f32 %v345_v13, %v345_v13  ;;  %v353_v17 = vadd.f32 %v345_v13, %v344_v12  ;;  %v369_v20 = vmul.f32 %v349_v10, %v349_v10  ;;  %v384_v25 = vld [vmem:[#allocation2 + $0x10] sm:$0xff]  ;;  %v395_v30 = vld [vmem:[#allocation3] sm:$0xff]  ;;  %v385_v34 = vld [vmem:[#allocation2 + $0x18] sm:$0xff] }
  0x3b   : > { %351 = vadd.xlane.f32.xlu0 %v350_v7  ;;  %v370_v11 = vadd.f32 %v363_v8, %v362_v6  ;;  %v376_v24 = vadd.f32 %v367_v22, %v366_v21  ;;  %v383_v35 = vld [vmem:[#allocation2 + $0x8] sm:$0xff]  ;;  %v398_v43 = vld [vmem:[#allocation3 + $0x18] sm:$0xff]  ;;  %v397_v44 = vld [vmem:[#allocation3 + $0x10] sm:$0xff] }
  0x3c   : > { %v373_v18 = vadd.f32 %v365_v15, %v364_v14  ;;  %v379_v23 = vadd.f32 %v369_v20, %v368_v19  ;;  %v396_v39 = vld [vmem:[#allocation3 + $0x8] sm:$0xff] }
  0x3d   : > { %371 = vadd.xlane.f32.xlu2 %v370_v11 }
  0x42   : > { %360 = vadd.xlane.f32.xlu1 %v359_v16 }
  0x43   : > { %354 = vadd.xlane.f32.xlu0 %v353_v17 }
  0x45   : > { %374 = vadd.xlane.f32.xlu2 %v373_v18 }
  0x4a   : > { %380 = vadd.xlane.f32.xlu1 %v379_v23 }
  0x4b   : > { %377 = vadd.xlane.f32.xlu0 %v376_v24 }
  0xad   : > { %v358_v27 = vpop.xlane.xlu1 %357 }
  0xae   : > { %v388_v28 = vadd.f32 %v384_v25, %v358_v27  ;;  %v352_v29 = vpop.xlane.xlu0 %351 }
  0xaf   : > { %v386_v31 = vadd.f32 %v382_v26, %v352_v29 }
  0xb0   : > { %393 = vst.msk [vmem:[#allocation2 + $0x10] sm:$0xff] %vm390_vm1, %v388_v28  ;;  %v372_v32 = vpop.xlane.xlu2 %371 }
  0xb1   : > { %391 = vst.msk [vmem:[#allocation2] sm:$0xff] %vm390_vm1, %v386_v31  ;;  %v399_v33 = vadd.f32 %v395_v30, %v372_v32 }
  0xb3   : > { %403 = vst.msk [vmem:[#allocation3] sm:$0xff] %vm390_vm1, %v399_v33 }
  0xb5   : > { %v361_v36 = vpop.xlane.xlu1 %360 }
  0xb6   : > { %v389_v37 = vadd.f32 %v385_v34, %v361_v36  ;;  %v355_v38 = vpop.xlane.xlu0 %354 }
  0xb7   : > { %v387_v40 = vadd.f32 %v383_v35, %v355_v38 }
  0xb8   : > { %394 = vst.msk [vmem:[#allocation2 + $0x18] sm:$0xff] %vm390_vm1, %v389_v37  ;;  %v375_v41 = vpop.xlane.xlu2 %374 }
  0xb9   : > { %392 = vst.msk [vmem:[#allocation2 + $0x8] sm:$0xff] %vm390_vm1, %v387_v40  ;;  %v400_v42 = vadd.f32 %v396_v39, %v375_v41 }
  0xbb   : > { %404 = vst.msk [vmem:[#allocation3 + $0x8] sm:$0xff] %vm390_vm1, %v400_v42 }
  0xbd   : > { %v381_v45 = vpop.xlane.xlu1 %380 }
  0xbe   : > { %v402_v46 = vadd.f32 %v398_v43, %v381_v45  ;;  %v378_v47 = vpop.xlane.xlu0 %377 }
  0xbf   : > { %v401_v48 = vadd.f32 %v397_v44, %v378_v47 }
  0xc0   : > { %406 = vst.msk [vmem:[#allocation3 + $0x18] sm:$0xff] %vm390_vm1, %v402_v46 }
  0xc1   : > { %405 = vst.msk [vmem:[#allocation3 + $0x10] sm:$0xff] %vm390_vm1, %v401_v48 }
  0xc2 PF: > { %408 = sbr.rel (!%p321_p3) target bundleno = 881 (0x371), region = 60  ;;  %s1279_s7 = smov (%p321_p3), 1   ;;  %v413_v52 = vld [vmem:[#allocation3] sm:$0xff] (%p321_p3)  ;;  %v414_v53 = vld [vmem:[#allocation3 + $0x8] sm:$0xff] (%p321_p3)  ;;  %v412_v55 = vld [vmem:[#allocation2 + $0x18] sm:$0xff] (%p321_p3)  ;;  %vm438_vm2 = vcmask (%p321_p3), 7168  }
  0xc3   : > { %v1126_v54 = vpack.i.bf16 (%p321_p3), %v413_v52, %v414_v53  ;;  %v420_v56 = vmul.f32 (%p321_p3), 0.00390625, %v412_v55  ;;  %v411_v7 = vld [vmem:[#allocation2 + $0x10] sm:$0xff] (%p321_p3)  ;;  %v410_v12 = vld [vmem:[#allocation2 + $0x8] sm:$0xff] (%p321_p3)  ;;  %v409_v16 = vld [vmem:[#allocation2] sm:$0xff] (%p321_p3)  ;;  %vm443_vm6 = vcmask (%p321_p3), 261120   ;;  %s1280_s15 = smov (%p321_p3), 127  }
  0xc4   : > { %v421_v18 = vld [vmem:[%s1576_s1] sm:$0xf] (%p321_p3)  ;;  %v419_v21 = vmul.f32 (%p321_p3), 0.00390625, %v411_v7  ;;  %v418_v22 = vmul.f32 (%p321_p3), 0.00390625, %v410_v12  ;;  %v417_v24 = vmul.f32 (%p321_p3), 0.00390625, %v409_v16 }
  0xc5   : > { %v540_v57 = vmul.f32 (%p321_p3), 256.0, %v420_v56 }
  0xc6   : > { %v539_v23 = vmul.f32 (%p321_p3), 256.0, %v419_v21  ;;  %v538_v25 = vmul.f32 (%p321_p3), 256.0, %v418_v22  ;;  %v537_v27 = vmul.f32 (%p321_p3), 256.0, %v417_v24 }
  0xc7   : > { %v416_v50 = vld [vmem:[#allocation3 + $0x18] sm:$0xff]  ;;  %v544_v58 = vmul.f32 %v540_v57, %v420_v56 }
  0xc8   : > { %v415_v49 = vld [vmem:[#allocation3 + $0x10] sm:$0xff]  ;;  %v543_v26 = vmul.f32 %v539_v23, %v419_v21  ;;  %v542_v28 = vmul.f32 %v538_v25, %v418_v22  ;;  %v541_v30 = vmul.f32 %v537_v27, %v417_v24 }
  0xc9   : > { %v1121_v51 = vpack.i.bf16 %v415_v49, %v416_v50  ;;  %v548_v59 = vsub.f32 %v416_v50, %v544_v58 }
  0xca   : > { %v547_v29 = vsub.f32 %v415_v49, %v543_v26  ;;  %v546_v31 = vsub.f32 %v414_v53, %v542_v28  ;;  %v545_v33 = vsub.f32 %v413_v52, %v541_v30 }
  0xcb   : > { %1122 = vrot.lane.b32.xlu0 %v1121_v51, %s1279_s7  ;;  %v552_v60 = vmul.f32 0.003921569, %v548_v59 }
  0xcc   : > { %v551_v32 = vmul.f32 0.003921569, %v547_v29  ;;  %v550_v34 = vmul.f32 0.003921569, %v546_v31  ;;  %v549_v35 = vmul.f32 0.003921569, %v545_v33 }
  0xcd   : > { %v556_v61 = vmax.f32 %v552_v60, 0.0 }
  0xce   : > { %v555_v36 = vmax.f32 %v551_v32, 0.0  ;;  %v554_v38 = vmax.f32 %v550_v34, 0.0  ;;  %v553_v40 = vmax.f32 %v549_v35, 0.0 }
  0xcf   : > { %v560_v62 = vadd.f32 0.001, %v556_v61 }
  0xd0   : > { %v559_v37 = vadd.f32 0.001, %v555_v36  ;;  %v558_v39 = vadd.f32 0.001, %v554_v38  ;;  %v557_v41 = vadd.f32 0.001, %v553_v40 }
  0xd1   : > { %1131 = vrsqrt.f32 %v560_v62  ;;  %vm597_vm3 = vweird.f32 %v560_v62 }
  0xd2   : > { %1133 = vrsqrt.f32 %v559_v37  ;;  %vm587_vm7 = vweird.f32 %v559_v37  ;;  %vm577_vm10 = vweird.f32 %v558_v39  ;;  %vm567_vm13 = vweird.f32 %v557_v41 }
  0xd3   : > { %1127 = vrot.lane.b32.xlu0 %v1126_v54, %s1279_s7  ;;  %1135 = vrsqrt.f32 %v558_v39 }
  0xd4   : > { %1137 = vrsqrt.f32 %v557_v41 }
  0xd7   : > { %v1132_v63 = vpop.eup %1131 }
  0xd8   : > { %v592_v0 = vmul.f32 %v1132_v63, %v560_v62  ;;  %vm598_vm4 = vweird.f32 %v1132_v63  ;;  %v1134_v42 = vpop.eup %1133 }
  0xd9   : > { %vm599_vm5 = vmor %vm597_vm3, %vm598_vm4  ;;  %v582_v43 = vmul.f32 %v1134_v42, %v559_v37  ;;  %v1136_v44 = vpop.eup %1135  ;;  %vm588_vm8 = vweird.f32 %v1134_v42  ;;  %vm504_vm4 = vcmask 1043456   ;;  %v486_v37 = vld [vmem:[%s1577_s2] sm:$0xff] }
  0xda   : > { %v593_v1 = vmul.f32 %v1132_v63, %v592_v0  ;;  %v572_v46 = vmul.f32 %v1136_v44, %v558_v39  ;;  %v1138_v47 = vpop.eup %1137  ;;  %vm589_vm9 = vmor %vm587_vm7, %vm588_vm8  ;;  %vm578_vm11 = vweird.f32 %v1136_v44 }
  0xdb   : > { %v583_v45 = vmul.f32 %v1134_v42, %v582_v43  ;;  %v562_v50 = vmul.f32 %v1138_v47, %v557_v41  ;;  %vm579_vm12 = vmor %vm577_vm10, %vm578_vm11  ;;  %vm568_vm14 = vweird.f32 %v1138_v47  ;;  %v487_v41 = vld [vmem:[%s1577_s2 + $0x8] sm:$0xff] }
  0xdc   : > { %v594_v2 = vmul.f32 0.5, %v593_v1  ;;  %v573_v49 = vmul.f32 %v1136_v44, %v572_v46  ;;  %vm569_vm15 = vmor %vm567_vm13, %vm568_vm14  ;;  %v488_v46 = vld [vmem:[%s1577_s2 + $0x10] sm:$0xff] }
  0xdd   : > { %v584_v48 = vmul.f32 0.5, %v583_v45  ;;  %v563_v53 = vmul.f32 %v1138_v47, %v562_v50 }
  0xde   : > { %v595_v6 = vsub.f32 1.5, %v594_v2  ;;  %v574_v52 = vmul.f32 0.5, %v573_v49  ;;  %v605_v2 = vld [vmem:[%s1578_s3] sm:$0xff] }
  0xdf   : > { %v585_v51 = vsub.f32 1.5, %v584_v48 }
  0xe0   : > { %v596_v10 = vmul.f32 %v1132_v63, %v595_v6 }
  0xe1   : > { %v586_v54 = vmul.f32 %v1134_v42, %v585_v51  ;;  %v489_v51 = vld [vmem:[%s1577_s2 + $0x18] sm:$0xff] }
  0xe2   : > { %v600_v15 = vsel %vm599_vm5, %v1132_v63, %v596_v10  ;;  %vm491_vm5 = vcmask 31744  }
  0xe3   : > { %v604_v19 = vmul.f32 %v600_v15, %v420_v56  ;;  %v564_v56 = vmul.f32 0.5, %v563_v53  ;;  %v590_v57 = vsel %vm589_vm9, %v1134_v42, %v586_v54  ;;  %v663_v54 = vld [vmem:[%s1579_s4] sm:$0xff]  ;;  %vm667_vm9 = vcmask 64512  }
  0xe4   : > { %v603_v59 = vmul.f32 %v590_v57, %v419_v21  ;;  %v710_v57 = vld [vmem:[%s1580_s5 + $0x8] sm:$0xff] }
  0xe5   : > { %v565_v60 = vsub.f32 1.5, %v564_v56  ;;  %v664_v56 = vld [vmem:[%s1579_s4 + $0x8] sm:$0xff] }
  0xe7   : > { %v566_v63 = vmul.f32 %v1138_v47, %v565_v60  ;;  %v666_v60 = vld [vmem:[%s1579_s4 + $0x18] sm:$0xff] }
  0xe9   : > { %v570_v0 = vsel %vm569_vm15, %v1138_v47, %v566_v63 }
  0xea   : > { %v601_v1 = vmul.f32 %v570_v0, %v417_v24 }
 0x13d   : > { %v1123_v3 = vpop.permute.xlu0 %1122 }
 0x13e   : > { %v1125_v4 = vunpack.i.h.bf16 %v1123_v3  ;;  %v1124_v5 = vunpack.i.l.bf16 %v1123_v3 }
 0x140   : > { %v442_v8 = vsel %vm438_vm2, %v412_v55, %v1124_v5  ;;  %v441_v9 = vsel %vm438_vm2, %v411_v7, %v1125_v4  ;;  %v575_v55 = vsub.f32 1.5, %v574_v52 }
 0x141   : > { %459 = vmatpush.msra.mxu2 %v442_v8 }
 0x142   : > { %v576_v58 = vmul.f32 %v1136_v44, %v575_v55  ;;  %v709_v55 = vld [vmem:[%s1580_s5] sm:$0xff] }
 0x143   : > { %460 = vmatpush.msra.mxu2 %v441_v9 }
 0x144   : > { %v580_v61 = vsel %vm579_vm12, %v1136_v44, %v576_v58  ;;  %v665_v58 = vld [vmem:[%s1579_s4 + $0x10] sm:$0xff] }
 0x145   : > { %v1128_v11 = vpop.permute.xlu0 %1127  ;;  %v602_v62 = vmul.f32 %v580_v61, %v418_v22  ;;  %v712_v61 = vld [vmem:[%s1580_s5 + $0x18] sm:$0xff] }
 0x146   : > { %v1130_v13 = vunpack.i.h.bf16 %v1128_v11  ;;  %v1129_v14 = vunpack.i.l.bf16 %v1128_v11 }
 0x148   : > { %v440_v17 = vsel %vm438_vm2, %v410_v12, %v1129_v14  ;;  %v439_v20 = vsel %vm438_vm2, %v409_v16, %v1130_v13 }
 0x149   : > { %461 = vmatpush.msra.mxu2 %v440_v17 }
 0x14b   : > { %462 = vmatpush.msra.mxu2 %v439_v20 }
 0x14c   : > { %1010 = vmatmul.msk.f32.vlgmr.msra.gmra.mxu2 %vm443_vm6, %v421_v18 }
 0x14d   : > { %621 = vmatpush.msrb.mxu2 %v604_v19 }
 0x14f   : > { %622 = vmatpush.msrb.mxu2 %v603_v59  ;;  %v711_v59 = vld [vmem:[%s1580_s5 + $0x10] sm:$0xff] }
 0x151   : > { %623 = vmatpush.msrb.mxu2 %v602_v62 }
 0x153   : > { %624 = vmatpush.msrb.mxu2 %v601_v1 }
 0x154   : > { %1016 = vmatmul.msk.f32.vlgmr.msrb.gmra.mxu2 %vm443_vm6, %v605_v2 }
 0x1cf   : > { %v464_v3 = vpop.f32.mrf.mxu2 }
 0x1d0   : > { %v467_v4 = vmul.f32 0.00048828125, %v464_v3 }
 0x1d2   : > { %v468_v5 = vmul.f32 %v467_v4, %v467_v4 }
 0x1d4   : > { %470 = vrot.lane.b32.xlu1 %v468_v5, %s1279_s7 }
 0x1d7   : > { %v626_v6 = vpop.f32.mrf.mxu2 }
 0x1d8   : > { %v629_v7 = vsel %vm438_vm2, %v626_v6, 0.0 }
 0x1d9   : > { %v630_v8 = vrot.slane %v629_v7, 4 }
 0x1db   : > { %v631_v9 = vadd.f32 %v630_v8, %v629_v7 }
 0x1dd   : > { %v632_v10 = vrot.slane %v631_v9, 2 }
 0x1df   : > { %v633_v11 = vadd.f32 %v632_v10, %v631_v9 }
 0x1e1   : > { %v634_v12 = vrot.slane %v633_v11, 1 }
 0x1e3   : > { %v635_v13 = vadd.f32 %v634_v12, %v633_v11 }
 0x1e5   : > { %v636_v16 = vmul.f32 0.125, %v635_v13 }
 0x1e7   : > { %v637_v18 = vsub.f32 %v626_v6, %v636_v16 }
 0x1e9   : > { %v638_v20 = vmul.f32 %v637_v18, %v637_v18 }
 0x1eb   : > { %v639_v21 = vsel %vm438_vm2, %v638_v20, 0.0 }
 0x1ec   : > { %v640_v22 = vrot.slane %v639_v21, 4 }
 0x1ee   : > { %v641_v23 = vadd.f32 %v640_v22, %v639_v21 }
 0x1f0   : > { %v642_v24 = vrot.slane %v641_v23, 2 }
 0x1f2   : > { %v643_v27 = vadd.f32 %v642_v24, %v641_v23 }
 0x1f4   : > { %v644_v29 = vrot.slane %v643_v27, 1 }
 0x1f6   : > { %v645_v31 = vadd.f32 %v644_v29, %v643_v27 }
 0x1f8   : > { %v646_v33 = vmul.f32 0.125, %v645_v31 }
 0x1fa   : > { %v647_v34 = vadd.f32 1e-05, %v646_v33 }
 0x1fc   : > { %vm654_vm6 = vweird.f32 %v647_v34 }
 0x246   : > { %v471_v14 = vpop.permute.xlu1 %470 }
 0x247   : > { %v473_v15 = vsub.f32 %v467_v4, %v471_v14 }
 0x249   : > { %v474_v17 = vmax.f32 %v473_v15, 0.0 }
 0x24b   : > { %v475_v19 = vadd.f32 1e-05, %v474_v17 }
 0x24d   : > { %1139 = vrsqrt.f32 %v475_v19  ;;  %vm482_vm1 = vweird.f32 %v475_v19 }
 0x24e   : > { %1141 = vrsqrt.f32 %v647_v34 }
 0x253   : > { %v1140_v25 = vpop.eup %1139 }
 0x254   : > { %v477_v26 = vmul.f32 %v1140_v25, %v475_v19  ;;  %vm483_vm0 = vweird.f32 %v1140_v25  ;;  %v1142_v39 = vpop.eup %1141 }
 0x255   : > { %vm484_vm3 = vmor %vm482_vm1, %vm483_vm0  ;;  %v649_v40 = vmul.f32 %v1142_v39, %v647_v34  ;;  %vm655_vm7 = vweird.f32 %v1142_v39 }
 0x256   : > { %v478_v28 = vmul.f32 %v1140_v25, %v477_v26  ;;  %vm656_vm8 = vmor %vm654_vm6, %vm655_vm7 }
 0x257   : > { %v650_v42 = vmul.f32 %v1142_v39, %v649_v40 }
 0x258   : > { %v479_v30 = vmul.f32 0.5, %v478_v28 }
 0x259   : > { %v651_v43 = vmul.f32 0.5, %v650_v42 }
 0x25a   : > { %v480_v32 = vsub.f32 1.5, %v479_v30 }
 0x25b   : > { %v652_v44 = vsub.f32 1.5, %v651_v43 }
 0x25c   : > { %v481_v35 = vmul.f32 %v1140_v25, %v480_v32 }
 0x25d   : > { %v653_v45 = vmul.f32 %v1142_v39, %v652_v44 }
 0x25e   : > { %v485_v36 = vsel %vm484_vm3, %v1140_v25, %v481_v35 }
 0x25f   : > { %v490_v38 = vsel %vm438_vm2, %v467_v4, %v485_v36  ;;  %v657_v47 = vsel %vm656_vm8, %v1142_v39, %v653_v45 }
 0x260   : > { %1011 = vmatpush.msk.msra.mxu1 %vm504_vm4, %v490_v38  ;;  %v658_v48 = vmul.f32 %v657_v47, %v637_v18 }
 0x261   : > { %1012 = vmatmul.msk.f32.vlgmr.msra.gmra.mxu1 %vm491_vm5, %v486_v37 }
 0x262   : > { %v659_v49 = vadd.f32 3.0, %v658_v48 }
 0x264   : > { %v660_v50 = vmax.f32 %v659_v49, 0.0 }
 0x266   : > { %v661_v52 = vmin.f32 %v660_v50, 6.0 }
 0x268   : > { %v662_v53 = vmul.f32 0.16666667, %v661_v52 }
 0x269   : > { %1013 = vmatmul.msk.f32.gmra.mxu1 %vm491_vm5, %v487_v41 }
 0x26a   : > { %695 = vmatpush.msra.mxu3 %v662_v53  ;;  %740 = vmatpush.msra.mxu0 %v662_v53 }
 0x26b   : > { %1017 = vmatmul.msk.f32.vlgmr.msra.gmra.mxu3 %vm667_vm9, %v663_v54  ;;  %1021 = vmatmul.msk.f32.vlgmr.msra.gmra.mxu0 %vm667_vm9, %v709_v55 }
 0x271   : > { %1014 = vmatmul.msk.f32.gmra.mxu1 %vm491_vm5, %v488_v46 }
 0x273   : > { %1018 = vmatmul.msk.f32.gmra.mxu3 %vm667_vm9, %v664_v56  ;;  %1022 = vmatmul.msk.f32.gmra.mxu0 %vm667_vm9, %v710_v57 }
 0x279   : > { %1015 = vmatmul.msk.f32.gmra.mxu1 %vm491_vm5, %v489_v51 }
 0x27b   : > { %1019 = vmatmul.msk.f32.gmra.mxu3 %vm667_vm9, %v665_v58  ;;  %1023 = vmatmul.msk.f32.gmra.mxu0 %vm667_vm9, %v711_v59 }
 0x283   : > { %1020 = vmatmul.msk.f32.gmra.mxu3 %vm667_vm9, %v666_v60  ;;  %1024 = vmatmul.msk.f32.gmra.mxu0 %vm667_vm9, %v712_v61 }
 0x2de   : > { %v525_v62 = vpop.f32.mrf.mxu1 }
 0x2df   : > { %758 = vrot.lane.b32.xlu1 %v525_v62, %s1280_s15 }
 0x2e6   : > { %v528_v63 = vpop.f32.mrf.mxu1 }
 0x2e7   : > { %760 = vrot.lane.b32.xlu2 %v528_v63, %s1280_s15 }
 0x2e8   : > { %v742_v3 = vpop.f32.mrf.mxu0 }
 0x2ee   : > { %v531_v0 = vpop.f32.mrf.mxu1  ;;  %v697_v2 = vpop.f32.mrf.mxu3 }
 0x2ef   : > { %762 = vrot.lane.b32.xlu2 %v531_v0, %s1280_s15 }
 0x2f0   : > { %v745_v6 = vpop.f32.mrf.mxu0 }
 0x2f6   : > { %v534_v1 = vpop.f32.mrf.mxu1  ;;  %v700_v4 = vpop.f32.mrf.mxu3 }
 0x2f7   : > { %764 = vrot.lane.b32.xlu0 %v534_v1, %s1280_s15 }
 0x2f8   : > { %v748_v13 = vpop.f32.mrf.mxu0 }
 0x2fe   : > { %v703_v10 = vpop.f32.mrf.mxu3 }
 0x300   : > { %v751_v23 = vpop.f32.mrf.mxu0 }
 0x306   : > { %v706_v20 = vpop.f32.mrf.mxu3 }
 0x341   : > { %v761_v5 = vpop.permute.xlu2 %760 }
 0x342   : > { %v771_v7 = vmul.f32 %v761_v5, %v700_v4 }
 0x344   : > { %775 = vst.msk [vmem:[#allocation4 + $0x8] sm:$0xff] %vm438_vm2, %v771_v7  ;;  %v779_v8 = vmul.f32 %v771_v7, %v528_v63 }
 0x346   : > { %v783_v9 = vsub.f32 %v745_v6, %v779_v8 }
 0x348   : > { %787 = vst.msk [vmem:[#allocation5 + $0x8] sm:$0xff] %vm438_vm2, %v783_v9 }
 0x349   : > { %v763_v11 = vpop.permute.xlu2 %762 }
 0x34a   : > { %v772_v12 = vmul.f32 %v763_v11, %v703_v10 }
 0x34c   : > { %776 = vst.msk [vmem:[#allocation4 + $0x10] sm:$0xff] %vm438_vm2, %v772_v12  ;;  %v780_v14 = vmul.f32 %v772_v12, %v531_v0 }
 0x34e   : > { %v784_v15 = vsub.f32 %v748_v13, %v780_v14 }
 0x350   : > { %788 = vst.msk [vmem:[#allocation5 + $0x10] sm:$0xff] %vm438_vm2, %v784_v15 }
 0x351   : > { %v759_v16 = vpop.permute.xlu1 %758 }
 0x352   : > { %v770_v17 = vmul.f32 %v759_v16, %v697_v2 }
 0x354   : > { %774 = vst.msk [vmem:[#allocation4] sm:$0xff] %vm438_vm2, %v770_v17  ;;  %v778_v18 = vmul.f32 %v770_v17, %v525_v62 }
 0x356   : > { %v782_v19 = vsub.f32 %v742_v3, %v778_v18 }
 0x358   : > { %786 = vst.msk [vmem:[#allocation5] sm:$0xff] %vm438_vm2, %v782_v19 }
 0x369   : > { %v765_v21 = vpop.permute.xlu0 %764 }
 0x36a   : > { %v773_v22 = vmul.f32 %v765_v21, %v706_v20 }
 0x36c   : > { %777 = vst.msk [vmem:[#allocation4 + $0x18] sm:$0xff] %vm438_vm2, %v773_v22  ;;  %v781_v24 = vmul.f32 %v773_v22, %v534_v1 }
 0x36e   : > { %v785_v25 = vsub.f32 %v751_v23, %v781_v24 }
 0x370   : > { %789 = vst.msk [vmem:[#allocation5 + $0x18] sm:$0xff] %vm438_vm2, %v785_v25 }
 0x371 PF: > { %p1025_p6 = scmp.ne.s32.totalorder %s1258_s24, 1 }
 0x373   : > { %793 = sbr.rel (%p1025_p6) target bundleno = 1027 (0x403), region = 64 }
 0x378   : > { %v796_v26 = vld [vmem:[#allocation4 + $0x10] sm:$0xff]  ;;  %v794_v27 = vld [vmem:[#allocation4] sm:$0xff]  ;;  %v1281_v28 = vmov 0   ;;  %v797_v30 = vld [vmem:[#allocation4 + $0x18] sm:$0xff] }
 0x379   : > { %1144 = vset.pattern.permute.xlu1 %v1281_v28  ;;  %1143 = vset.pattern.permute.xlu0 %v1281_v28  ;;  %v798_v29 = vld [vmem:[#allocation5] sm:$0xff]  ;;  %v795_v31 = vld [vmem:[#allocation4 + $0x8] sm:$0xff]  ;;  %v801_v33 = vld [vmem:[#allocation5 + $0x18] sm:$0xff] }
 0x37a   : > { %822 = vperm.xlu1 %1144, %v796_v26   ;;  %812 = vperm.xlu0 %1143, %v794_v27   ;;  %v799_v32 = vld [vmem:[#allocation5 + $0x8] sm:$0xff]  ;;  %v800_v34 = vld [vmem:[#allocation5 + $0x10] sm:$0xff]  ;;  %v802_v35 = vld [vmem:[%s1410_s19] sm:$0xff] }
 0x37b   : > { %1145 = vset.pattern.permute.xlu2 %v1281_v28  ;;  %v803_v36 = vld [vmem:[%s1410_s19 + $0x8] sm:$0xff]  ;;  %v804_v44 = vld [vmem:[%s1410_s19 + $0x10] sm:$0xff]  ;;  %v805_v45 = vld [vmem:[%s1410_s19 + $0x18] sm:$0xff] }
 0x37c   : > { %840 = vperm.xlu2 %1145, %v798_v29   ;;  %v806_v53 = vld [vmem:[%s1410_s19 + $0x20] sm:$0xff]  ;;  %v808_v54 = vld [vmem:[%s1410_s19 + $0x30] sm:$0xff]  ;;  %v809_v55 = vld [vmem:[%s1410_s19 + $0x38] sm:$0xff] }
 0x37d   : > { %v807_v56 = vld [vmem:[%s1410_s19 + $0x28] sm:$0xff] }
 0x382   : > { %827 = vperm.xlu1 %1144, %v797_v30   ;;  %817 = vperm.xlu0 %1143, %v795_v31  }
 0x384   : > { %845 = vperm.xlu2 %1145, %v799_v32  }
 0x38a   : > { %855 = vperm.xlu1 %1144, %v801_v33   ;;  %850 = vperm.xlu0 %1143, %v800_v34  }
 0x3d6   : > { %v841_v37 = vpop.permute.xlu2 %840 }
 0x3de   : > { %v846_v50 = vpop.permute.xlu2 %845 }
 0x3ec   : > { %v823_v38 = vpop.permute.xlu1 %822  ;;  %v813_v39 = vpop.permute.xlu0 %812 }
 0x3ed   : > { %v830_v40 = vmul.f32 %v813_v39, %v802_v35  ;;  %v831_v41 = vmul.f32 %v813_v39, %v803_v36  ;;  %v834_v57 = vmul.f32 %v823_v38, %v806_v53  ;;  %v835_v60 = vmul.f32 %v823_v38, %v807_v56 }
 0x3ef   : > { %v858_v42 = vadd.f32 %v841_v37, %v830_v40  ;;  %v859_v43 = vadd.f32 %v841_v37, %v831_v41 }
 0x3f1   : > { %866 = vst [vmem:[%s1417_s26] sm:$0xff] %v858_v42 }
 0x3f2   : > { %867 = vst [vmem:[%s1417_s26 + $0x8] sm:$0xff] %v859_v43 }
 0x3f4   : > { %v828_v46 = vpop.permute.xlu1 %827  ;;  %v818_v47 = vpop.permute.xlu0 %817 }
 0x3f5   : > { %v832_v48 = vmul.f32 %v818_v47, %v804_v44  ;;  %v833_v49 = vmul.f32 %v818_v47, %v805_v45  ;;  %v836_v58 = vmul.f32 %v828_v46, %v808_v54  ;;  %v837_v59 = vmul.f32 %v828_v46, %v809_v55 }
 0x3f7   : > { %v860_v51 = vadd.f32 %v846_v50, %v832_v48  ;;  %v861_v52 = vadd.f32 %v846_v50, %v833_v49 }
 0x3f9   : > { %868 = vst [vmem:[%s1417_s26 + $0x10] sm:$0xff] %v860_v51 }
 0x3fa   : > { %869 = vst [vmem:[%s1417_s26 + $0x18] sm:$0xff] %v861_v52 }
 0x3fc   : > { %v856_v61 = vpop.permute.xlu1 %855  ;;  %v851_v62 = vpop.permute.xlu0 %850 }
 0x3fd   : > { %v864_v63 = vadd.f32 %v856_v61, %v836_v58  ;;  %v865_v0 = vadd.f32 %v856_v61, %v837_v59  ;;  %v862_v1 = vadd.f32 %v851_v62, %v834_v57  ;;  %v863_v2 = vadd.f32 %v851_v62, %v835_v60 }
 0x3ff   : > { %872 = vst [vmem:[%s1417_s26 + $0x30] sm:$0xff] %v864_v63 }
 0x400   : > { %873 = vst [vmem:[%s1417_s26 + $0x38] sm:$0xff] %v865_v0 }
 0x401   : > { %870 = vst [vmem:[%s1417_s26 + $0x20] sm:$0xff] %v862_v1 }
 0x402   : > { %871 = vst [vmem:[%s1417_s26 + $0x28] sm:$0xff] %v863_v2 }
 0x403 PF: > { %s1034_s24 = sshll.u32 %s1262_s25, 6  ;;  %s894_s30 = sshll.u32 %s1417_s26, 4  ;;  %s895_s30 = int_to_ptr.vmem [resolvable:$true] %s894_s30 }
 0x404   : > { %s893_s29 = scalar_lea.hbm %s1581_s6, %s1034_s24  ;;  %s875_s17 = scalar_lea.sflag [#allocation8], %s1406_s9 }
 0x405   : > { %s896_s13 = sshll.u32 %s893_s29, 4  ;;  %s1196_s25 = scalar_lea.hbm %s1581_s6, 128  ;;  %s897_s13 = int_to_ptr.hbm [resolvable:$true] %s896_s13 }
 0x406   : > { %s1190_s18 = sshra.s32 %s897_s13, 4  ;;  %s1191_s18 = int_to_ptr.hbm [resolvable:$true] %s1190_s18 }
 0x407   : > { %s1192_s7 = scalar_lea.hbm %s1191_s18, 64  ;;  %p1197_p12 = scmp.lt.s32.totalorder %s1191_s18, %s1581_s6 }
 0x408   : > { %p1193_p7 = scmp.ne.s32.totalorder %s1191_s18, %s1192_s7  ;;  %p1198_p13 = scmp.lt.s32.totalorder %s1196_s25, %s1192_s7 }
 0x40a   : > { %p1194_p8 = pnand %p1193_p7, %p1382_p10  ;;  %p1199_p0 = por %p1198_p13, %p1197_p12 }
 0x40c   : > { %p1195_p9 = pneg %p1194_p8 }
 0x40e   : > { %p1200_p1 = pnand %p1199_p0, %p1195_p9 }
 0x410   : > { %1203 = shalt.err (!%p1200_p1)
}
 0x411   : > { %s1282_s9 = smov 256   ;;  %s1283_s26 = smov 16  }
 0x412   : > { %1037 = dma.vmem_to_hbm [thread:$0]  (%p1382_p10), %s895_s30, 1024, %s897_s13, %s875_s17, %s1282_s9, %s1282_s9, %s1283_s26  }
 0x413 PF: > { %p1048_p2 = scmp.ge.s32.totalorder %s1274_s28, 2  ;;  %s911_s24 = sand.u32 1, %s1246_s21  }
 0x414   : > { %s912_s19 = scalar_lea.sflag [#allocation8], %s911_s24 }
 0x415   : > { %p1044_p4 = pnand %p1048_p2, %p1388_p11 }
 0x417   : > { %p1045_p3 = pneg %p1044_p4 }
 0x419   : > { %1241 = dma.done.wait (%p1045_p3), %s912_s19, 1024  }
 0x41a   : > { %1243 = vsyncadd (%p1045_p3), %s912_s19, 4294966272  ;;  %s22_s28 = sadd.s32 1, %s1274_s28   ;;  %s1594_s24 = sld [smem:[#allocation12_spill]] }
 0x41b   : > { %p19_p5 = scmp.ge.s32.totalorder %s22_s28, 6   ;;  %s1595_s26 = sld [smem:[#allocation13_spill]] }
 0x41c   : > { %s1596_s12 = sld [smem:[#allocation14_spill]]  ;;  %s1597_s21 = smov %s1250_s22 }
 0x41d   : > { %s1598_s22 = smov %s1254_s23  ;;  %s1599_s23 = smov %s1395_s16 }
 0x41e   : > { %s1600_s25 = smov %s1270_s27  ;;  %21 = sbr.rel (!%p19_p5) target bundleno = 7 (0x7), region = 105 }
 0x422   : > { %s1601_s27 = smov %s1596_s12 }
 0x423   :  { %918 = vsyncpa [#allocation7], 1 }
 0x424   :  { %920 = vsyncpa [#allocation7 + $0x1], 1 }
 0x425   :  { %921 = vsyncpa [#allocation8], 1 }
 0x426   :  { %923 = vsyncpa [#allocation8 + $0x1], 1 }

</bundles_post_ra>
